<compile_context>
chip_gen: v6e
topology: v6e:2x2x1
jax: 0.10.0
libtpu: 0.0.40
codegen_flags: <defaults>
</compile_context>

<pallas_src>
import functools
import math

import jax
import jax.numpy as jnp
from jax.experimental import pallas as pl
from jax.experimental.pallas import tpu as pltpu

LEAKY_SLOPE = 0.01   # nn.LeakyReLU() default
BN_EPS = 1e-5        # nn.BatchNorm1d default


def _lrelu(v):
    return jnp.where(v >= 0, v, LEAKY_SLOPE * v)


def _conv1_taps(x, halo_l, halo_r0, scale1, shift1, col, at_start, at_end, blk):
    """BN1 + LeakyReLU + ReplicationPad1d(1) neighbour taps for one token block."""
    h = _lrelu(x * scale1 + shift1)
    h_l = _lrelu(halo_l * scale1 + shift1)     # token just left of the block
    h_r = _lrelu(halo_r0 * scale1 + shift1)    # token just right of the block
    lane_first = col == 0
    lane_last = col == blk - 1
    # neighbours via XLU roll; block edges patched from the halo columns,
    # sequence edges replication-clamped.
    h_prev = jnp.where(lane_first, h_l, pltpu.roll(h, shift=1, axis=1))
    h_prev = jnp.where(at_start, h, h_prev)
    h_next = jnp.where(lane_last, h_r, pltpu.roll(h, shift=blk - 1, axis=1))
    h_next = jnp.where(at_end, h, h_next)
    return h, h_prev, h_next, h_r


def _resblock_stats_kernel(x_ref, halo_ref, g1_ref, b1_ref, w1_ref, bc1_ref,
                           g2_ref, b2_ref,
                           sc1_ref, sh1_ref, sc2_ref, sh2_ref,
                           s1_ref, ss1_ref, s2_ref, ss2_ref,
                           *, n_valid, seq_len, blk):
    """grid=(2, NB): phase 0 = BN1 statistics over x, phase 1 = BN2 statistics
    over y1 = Conv1d(LReLU(BN1(x))).  Outputs are fused scale/shift slabs."""
    phase = pl.program_id(0)
    b = pl.program_id(1)
    nb = pl.num_programs(1)
    inv_n = 1.0 / n_valid

    col = jax.lax.broadcasted_iota(jnp.int32, (1, blk), 1)
    tok = col + b * blk
    valid = tok < n_valid
    # Lane reductions go through the (otherwise idle) MXU instead of the XLU:
    # a dot with a ones block yields an all-lanes-equal (C, 128) partial sum.
    ones = jnp.ones((blk, 128), jnp.float32)

    @pl.when(jnp.logical_and(phase == 0, b == 0))
    def _():
        s1_ref[...] = jnp.zeros_like(s1_ref)
        ss1_ref[...] = jnp.zeros_like(ss1_ref)

    @pl.when(phase == 0)
    def _():
        x = x_ref[...]                 # pad lanes of xs are exactly zero
        s1_ref[...] += jnp.dot(x, ones, preferred_element_type=jnp.float32)
        ss1_ref[...] += jnp.dot(x * x, ones, preferred_element_type=jnp.float32)

    @pl.when(jnp.logical_and(phase == 0, b == nb - 1))
    def _():
        mean = s1_ref[...] * inv_n
        # TODO(synk): single-pass E[x^2]-mean^2 can cancel at very large N*L;
        # switch to a shifted / two-pass variance for production scale.
        var = jnp.maximum(ss1_ref[...] * inv_n - mean * mean, 0.0)
        scale = g1_ref[...] * jax.lax.rsqrt(var + BN_EPS)
        sc1_ref[...] = scale
        sh1_ref[...] = b1_ref[...] - mean * scale

    @pl.when(jnp.logical_and(phase == 1, b == 0))
    def _():
        s2_ref[...] = jnp.zeros_like(s2_ref)
        ss2_ref[...] = jnp.zeros_like(ss2_ref)

    @pl.when(phase == 1)
    def _():
        x = x_ref[...]
        pos = tok % seq_len
        at_start = pos == 0
        at_end = pos == seq_len - 1
        scale1 = sc1_ref[:, 0:1]
        shift1 = sh1_ref[:, 0:1]
        h, h_prev, h_next, _ = _conv1_taps(
            x, halo_ref[:, 0:1], halo_ref[:, 1:2],
            scale1, shift1, col, at_start, at_end, blk)
        # K = 3*C_in: single im2col dot while K < 128 (see perf TODO above).
        rhs1 = jnp.concatenate([h_prev, h, h_next], axis=0)
        y1 = jnp.dot(w1_ref[...], rhs1,
                     preferred_element_type=jnp.float32) + bc1_ref[...]
        y1 = jnp.where(valid, y1, 0.0)       # keep pad lanes out of the stats
        s2_ref[...] += jnp.dot(y1, ones, preferred_element_type=jnp.float32)
        ss2_ref[...] += jnp.dot(y1 * y1, ones, preferred_element_type=jnp.float32)

    @pl.when(jnp.logical_and(phase == 1, b == nb - 1))
    def _():
        mean = s2_ref[...] * inv_n
        var = jnp.maximum(ss2_ref[...] * inv_n - mean * mean, 0.0)
        scale = g2_ref[...] * jax.lax.rsqrt(var + BN_EPS)
        sc2_ref[...] = scale
        sh2_ref[...] = b2_ref[...] - mean * scale


def _resblock_main_kernel(x_ref, halo_ref, sc1_ref, sh1_ref, w1_ref, bc1_ref,
                          sc2_ref, sh2_ref, we_ref, wo_ref, bout_ref, out_ref,
                          *, seq_len, blk):
    """grid=(NB,), fully parallel per token block."""
    b = pl.program_id(0)
    x = x_ref[...]

    col = jax.lax.broadcasted_iota(jnp.int32, (1, blk), 1)
    tok = col + b * blk
    pos = tok % seq_len
    at_start = pos == 0
    at_end = pos == seq_len - 1
    lane_last = col == blk - 1

    scale1 = sc1_ref[:, 0:1]
    shift1 = sh1_ref[:, 0:1]
    scale2 = sc2_ref[:, 0:1]
    shift2 = sh2_ref[:, 0:1]
    halo_l = halo_ref[:, 0:1]
    halo_r0 = halo_ref[:, 1:2]
    halo_r1 = halo_ref[:, 2:3]

    # ---- BN1 + LeakyReLU + ReplicationPad1d(1) + Conv1d(k=3) ----
    h, h_prev, h_next, h_r0 = _conv1_taps(
        x, halo_l, halo_r0, scale1, shift1, col, at_start, at_end, blk)
    rhs1 = jnp.concatenate([h_prev, h, h_next], axis=0)
    y1 = jnp.dot(w1_ref[...], rhs1,
                 preferred_element_type=jnp.float32) + bc1_ref[...]

    # ---- BN2 + LeakyReLU ----
    h2 = _lrelu(y1 * scale2 + shift2)

    # h2 at the first token of the NEXT block (needed by the odd-phase output at
    # this block's last token): one extra (C_out, 1) conv column from the halo.
    h_r1 = _lrelu(halo_r1 * scale1 + shift1)
    e_pos = ((b + 1) * blk) % seq_len
    h_e_prev = jnp.where(e_pos == 0, h_r0, h[:, blk - 1:blk])
    h_e_next = jnp.where(e_pos == seq_len - 1, h_r0, h_r1)
    y1_e = jnp.dot(w1_ref[...],
                   jnp.concatenate([h_e_prev, h_r0, h_e_next], axis=0),
                   preferred_element_type=jnp.float32) + bc1_ref[...]
    h2_e = _lrelu(y1_e * scale2 + shift2)

    # ---- ConvTranspose1d(k=3, s=2, p=1, op=1): even/odd phase decomposition ----
    #   out[2j]   = W[:,:,1]^T @ in[j]
    #   out[2j+1] = W[:,:,2]^T @ in[j] + W[:,:,0]^T @ in[j+1]   (in[L] := 0)
    # main (h2) and shortcut (x) fused; cat_cur built once, cat_nxt via one roll.
    cat_cur = jnp.concatenate([h2, x], axis=0)
    cat_edge = jnp.concatenate([h2_e, halo_r0], axis=0)
    cat_nxt = jnp.where(lane_last, cat_edge,
                        pltpu.roll(cat_cur, shift=blk - 1, axis=1))
    cat_nxt = jnp.where(at_end, 0.0, cat_nxt)

    bias = bout_ref[...]
    out_ref[0] = jnp.dot(we_ref[...], cat_cur,
                         preferred_element_type=jnp.float32) + bias
    out_ref[1] = jnp.dot(wo_ref[...],
                         jnp.concatenate([cat_cur, cat_nxt], axis=0),
                         preferred_element_type=jnp.float32) + bias


def _round_up(v, mult):
    return ((v + mult - 1) // mult) * mult


def _vmem_capacity_bytes():
    try:
        return int(pltpu.get_tpu_info().vmem_capacity_bytes)
    except Exception:
        return 128 << 20


def _pick_block_lanes(m, vmem_bytes):
    # v7x exposes 64 MiB VMEM per TensorCore (vs 128 MiB on v5e/v6e): halve the
    # lane block there so double-buffering of all live slabs still fits.
    base = 512 if vmem_bytes <= (64 << 20) else 1024
    return min(base, _round_up(max(m, 1), 128))


def resblock_decoder_forward(x, params, *, block_lanes=None):
    """x: (N, C_in, L) -> (N, C_out, 2L). Parameters in PyTorch layouts."""
    n, c_in, length = x.shape
    f32 = lambda a: jnp.asarray(a, jnp.float32)
    w1 = f32(params["conv1_w"])            # (C_out, C_in, 3)
    w2 = f32(params["convt2_w"])           # (C_hid=C_out, C_out, 3)
    ws = f32(params["convts_w"])           # (C_in, C_out, 3)
    c_out = w1.shape[0]

    m = n * length
    vmem_bytes = _vmem_capacity_bytes()
    blk = block_lanes if block_lanes is not None else _pick_block_lanes(m, vmem_bytes)
    blk = max(128, _round_up(int(blk), 128))
    nb = max(1, -(-m // blk))
    mp = nb * blk
    # Per-block live slabs are a few tens of C rows * blk lanes * 4B (tiny at
    # these channel counts); keep the limit at <= half of physical VMEM.
    vmem_limit = int(max(32 << 20, min(vmem_bytes // 2, 64 << 20)))

    # Lane-dense slab: channels on sublanes, flattened tokens (n*L + l) on lanes.
    xs_tok = jnp.transpose(f32(x), (1, 0, 2)).reshape(c_in, m)
    xs = jnp.pad(xs_tok, ((0, 0), (0, mp - m)))

    # Per-block halo columns (x at tokens b*blk-1, (b+1)*blk, (b+1)*blk+1) so the
    # k=3 stencil never needs cross-block DMA.  Only lanes 0..2 of each 128-lane
    # tile are used; the array is tiny relative to x.
    bidx = jnp.arange(nb)

    def _edge(t):
        ok = (t >= 0) & (t < m)
        colv = xs_tok[:, jnp.clip(t, 0, m - 1)]
        return jnp.where(ok[None, :], colv, 0.0)

    halo = jnp.zeros((c_in, nb, 128), jnp.float32)
    halo = halo.at[:, :, 0].set(_edge(bidx * blk - 1))
    halo = halo.at[:, :, 1].set(_edge((bidx + 1) * blk))
    halo = halo.at[:, :, 2].set(_edge((bidx + 1) * blk + 1))
    halo = halo.reshape(c_in, nb * 128)

    # Conv1d weight in tap-major im2col layout (matches [h_prev, h, h_next]).
    w1f = jnp.transpose(w1, (0, 2, 1)).reshape(c_out, 3 * c_in)
    # Fused even/odd ConvTranspose weights; w_odd ordered as [cur | next] so the
    # kernel reuses the cat_cur=[h2; x] slab for both phases.
    w_even = jnp.concatenate([w2[:, :, 1].T, ws[:, :, 1].T], axis=1)
    w_odd = jnp.concatenate([w2[:, :, 2].T, ws[:, :, 2].T,
                             w2[:, :, 0].T, ws[:, :, 0].T], axis=1)
    b_out = (f32(params["convt2_b"]) + f32(params["convts_b"])).reshape(c_out, 1)
    bc1 = f32(params["conv1_b"]).reshape(c_out, 1)
    g1 = f32(params["bn1_g"]).reshape(c_in, 1)
    b1 = f32(params["bn1_b"]).reshape(c_in, 1)
    g2 = f32(params["bn2_g"]).reshape(c_out, 1)
    b2 = f32(params["bn2_b"]).reshape(c_out, 1)

    # Constant index maps: weights / per-channel params DMA'd once, VMEM-resident.
    def const2(shape):
        return pl.BlockSpec(shape, lambda p, b, _s=len(shape): (0,) * _s)

    def const1(shape):
        return pl.BlockSpec(shape, lambda b, _s=len(shape): (0,) * _s)

    # ---- Call 1: BN statistics (reduction phases, accumulators in scratch) ----
    stats_kernel = functools.partial(_resblock_stats_kernel,
                                     n_valid=m, seq_len=length, blk=blk)
    sc1, sh1, sc2, sh2 = pl.pallas_call(
        stats_kernel,
        out_shape=[jax.ShapeDtypeStruct((c_in, 128), jnp.float32),
                   jax.ShapeDtypeStruct((c_in, 128), jnp.float32),
                   jax.ShapeDtypeStruct((c_out, 128), jnp.float32),
                   jax.ShapeDtypeStruct((c_out, 128), jnp.float32)],
        grid_spec=pltpu.PrefetchScalarGridSpec(
            num_scalar_prefetch=0,
            grid=(2, nb),
            in_specs=[
                pl.BlockSpec((c_in, blk), lambda p, b: (0, b)),
                pl.BlockSpec((c_in, 128), lambda p, b: (0, b)),
                const2((c_in, 1)), const2((c_in, 1)),
                const2((c_out, 3 * c_in)), const2((c_out, 1)),
                const2((c_out, 1)), const2((c_out, 1)),
            ],
            out_specs=[const2((c_in, 128)), const2((c_in, 128)),
                       const2((c_out, 128)), const2((c_out, 128))],
            scratch_shapes=[pltpu.VMEM((c_in, 128), jnp.float32),
                            pltpu.VMEM((c_in, 128), jnp.float32),
                            pltpu.VMEM((c_out, 128), jnp.float32),
                            pltpu.VMEM((c_out, 128), jnp.float32)]),
        compiler_params=pltpu.CompilerParams(
            dimension_semantics=("arbitrary", "arbitrary"),
            vmem_limit_bytes=vmem_limit),
    )(xs, halo, g1, b1, w1f, bc1, g2, b2)

    # ---- Call 2: main compute, embarrassingly parallel over token blocks ----
    main_kernel = functools.partial(_resblock_main_kernel, seq_len=length, blk=blk)
    out = pl.pallas_call(
        main_kernel,
        out_shape=jax.ShapeDtypeStruct((2, c_out, mp), jnp.float32),
        grid_spec=pltpu.PrefetchScalarGridSpec(
            num_scalar_prefetch=0,
            grid=(nb,),
            in_specs=[
                pl.BlockSpec((c_in, blk), lambda b: (0, b)),
                pl.BlockSpec((c_in, 128), lambda b: (0, b)),
                const1((c_in, 128)), const1((c_in, 128)),
                const1((c_out, 3 * c_in)), const1((c_out, 1)),
                const1((c_out, 128)), const1((c_out, 128)),
                const1((c_out, c_out + c_in)),
                const1((c_out, 2 * (c_out + c_in))),
                const1((c_out, 1)),
            ],
            out_specs=pl.BlockSpec((2, c_out, blk), lambda b: (0, 0, b))),
        compiler_params=pltpu.CompilerParams(
            dimension_semantics=("parallel",),   # v7x: shard blocks across 2 TCs
            vmem_limit_bytes=vmem_limit),
    )(xs, halo, sc1, sh1, w1f, bc1, sc2, sh2, w_even, w_odd, b_out)

    # Layout plumbing back to (N, C_out, 2L): interleave even/odd phases.
    even = out[0, :, :m].reshape(c_out, n, length)
    odd = out[1, :, :m].reshape(c_out, n, length)
    y = jnp.stack([even, odd], axis=-1).reshape(c_out, n, 2 * length)
    return jnp.transpose(y, (1, 0, 2))


def resblock_decoder_reference(x, params):
    """Pure-JAX reference of the same forward pass (for correctness check)."""
    def bn(h, g, b):
        mean = jnp.mean(h, axis=(0, 2), keepdims=True)
        var = jnp.mean((h - mean) ** 2, axis=(0, 2), keepdims=True)
        return (h - mean) / jnp.sqrt(var + BN_EPS) * g.reshape(1, -1, 1) + b.reshape(1, -1, 1)

    def conv_transpose(h, w, b):   # PyTorch ConvTranspose1d(k=3, s=2, p=1, op=1); w: (Cin, Cout, 3)
        w_flip = jnp.transpose(w, (1, 0, 2))[:, :, ::-1]
        y = jax.lax.conv_general_dilated(
            h, w_flip, window_strides=(1,), padding=[(1, 2)], lhs_dilation=(2,),
            dimension_numbers=("NCH", "OIH", "NCH"))
        return y + b.reshape(1, -1, 1)

    h = _lrelu(bn(x, params["bn1_g"], params["bn1_b"]))
    hp = jnp.pad(h, ((0, 0), (0, 0), (1, 1)), mode="edge")           # ReplicationPad1d(1)
    y1 = jax.lax.conv_general_dilated(
        hp, params["conv1_w"], window_strides=(1,), padding="VALID",
        dimension_numbers=("NCH", "OIH", "NCH")) + params["conv1_b"].reshape(1, -1, 1)
    h2 = _lrelu(bn(y1, params["bn2_g"], params["bn2_b"]))
    main = conv_transpose(h2, params["convt2_w"], params["convt2_b"])
    short = conv_transpose(x, params["convts_w"], params["convts_b"])
    return main + short


if __name__ == "__main__":
    def make_params(key, c_in, c_out):
        ks = jax.random.split(key, 10)

        def uni(k, shape, fan_in):
            bound = 1.0 / math.sqrt(fan_in)
            return jax.random.uniform(k, shape, jnp.float32, -bound, bound)

        return {
            "bn1_g": 1.0 + 0.1 * jax.random.normal(ks[0], (c_in,), jnp.float32),
            "bn1_b": 0.1 * jax.random.normal(ks[1], (c_in,), jnp.float32),
            "conv1_w": uni(ks[2], (c_out, c_in, 3), c_in * 3),
            "conv1_b": uni(ks[3], (c_out,), c_in * 3),
            "bn2_g": 1.0 + 0.1 * jax.random.normal(ks[4], (c_out,), jnp.float32),
            "bn2_b": 0.1 * jax.random.normal(ks[5], (c_out,), jnp.float32),
            "convt2_w": uni(ks[6], (c_out, c_out, 3), c_out * 3),   # (in=hidden, out, K)
            "convt2_b": uni(ks[7], (c_out,), c_out * 3),
            "convts_w": uni(ks[8], (c_in, c_out, 3), c_out * 3),    # (in=input_nc, out, K)
            "convts_b": uni(ks[9], (c_out,), c_out * 3),
        }

    key = jax.random.PRNGKey(0)
    k1, k2, k3 = jax.random.split(key, 3)
    C_IN, C_OUT = 8, 8
    params = make_params(k1, C_IN, C_OUT)

    # Test 1: small single-block case (auto block size).
    N, L = 2, 16
    x = jax.random.normal(k2, (N, C_IN, L), jnp.float32)
    out = jax.block_until_ready(resblock_decoder_forward(x, params))
    ref = resblock_decoder_reference(x, params)
    assert out.shape == (N, C_OUT, 2 * L), out.shape
    err = float(jnp.max(jnp.abs(out - ref)))
    assert err < 3e-4, f"single-block max abs err = {err}"

    # Test 2: multi-block case (3 token blocks of 128 lanes, block boundaries
    # falling mid-sequence) to exercise the gridded BN phases and k=3 halos.
    N2, L2 = 3, 96
    x2 = jax.random.normal(k3, (N2, C_IN, L2), jnp.float32)
    out2 = jax.block_until_ready(
        resblock_decoder_forward(x2, params, block_lanes=128))
    ref2 = resblock_decoder_reference(x2, params)
    assert out2.shape == (N2, C_OUT, 2 * L2), out2.shape
    err2 = float(jnp.max(jnp.abs(out2 - ref2)))
    assert err2 < 3e-4, f"multi-block max abs err = {err2}"

    print("KERNEL_OK")
</pallas_src>

<mosaic_0001>
module attributes {stable_mosaic.version = 11 : i64} {
  func.func @_resblock_stats_kernel(%arg0: i32, %arg1: i32, %arg2: memref<8x128xf32, #tpu.memory_space<vmem>>, %arg3: memref<8x128xf32, #tpu.memory_space<vmem>>, %arg4: memref<8x1xf32, #tpu.memory_space<vmem>>, %arg5: memref<8x1xf32, #tpu.memory_space<vmem>>, %arg6: memref<8x24xf32, #tpu.memory_space<vmem>>, %arg7: memref<8x1xf32, #tpu.memory_space<vmem>>, %arg8: memref<8x1xf32, #tpu.memory_space<vmem>>, %arg9: memref<8x1xf32, #tpu.memory_space<vmem>>, %arg10: memref<8x128xf32, #tpu.memory_space<vmem>>, %arg11: memref<8x128xf32, #tpu.memory_space<vmem>>, %arg12: memref<8x128xf32, #tpu.memory_space<vmem>>, %arg13: memref<8x128xf32, #tpu.memory_space<vmem>>, %arg14: memref<8x128xf32, #tpu.memory_space<vmem>>, %arg15: memref<8x128xf32, #tpu.memory_space<vmem>>, %arg16: memref<8x128xf32, #tpu.memory_space<vmem>>, %arg17: memref<8x128xf32, #tpu.memory_space<vmem>>) attributes {dimension_semantics = [#tpu.dimension_semantics<arbitrary>, #tpu.dimension_semantics<arbitrary>], iteration_bounds = array<i64: 2, 1>, scalar_prefetch = 0 : i64, scratch_operands = 4 : i64, tpu.core_type = #tpu.core_type<tc>, window_params = [{transform_indices = @transform_0, window_bounds = array<i64: 8, 128>}, {transform_indices = @transform_1, window_bounds = array<i64: 8, 128>}, {pipeline_mode = #tpu.pipeline_mode<synchronous>, transform_indices = @transform_2, window_bounds = array<i64: 8, 1>}, {pipeline_mode = #tpu.pipeline_mode<synchronous>, transform_indices = @transform_3, window_bounds = array<i64: 8, 1>}, {pipeline_mode = #tpu.pipeline_mode<synchronous>, transform_indices = @transform_4, window_bounds = array<i64: 8, 24>}, {pipeline_mode = #tpu.pipeline_mode<synchronous>, transform_indices = @transform_5, window_bounds = array<i64: 8, 1>}, {pipeline_mode = #tpu.pipeline_mode<synchronous>, transform_indices = @transform_6, window_bounds = array<i64: 8, 1>}, {pipeline_mode = #tpu.pipeline_mode<synchronous>, transform_indices = @transform_7, window_bounds = array<i64: 8, 1>}, {pipeline_mode = #tpu.pipeline_mode<synchronous>, transform_indices = @transform_8, window_bounds = array<i64: 8, 128>}, {pipeline_mode = #tpu.pipeline_mode<synchronous>, transform_indices = @transform_9, window_bounds = array<i64: 8, 128>}, {pipeline_mode = #tpu.pipeline_mode<synchronous>, transform_indices = @transform_10, window_bounds = array<i64: 8, 128>}, {pipeline_mode = #tpu.pipeline_mode<synchronous>, transform_indices = @transform_11, window_bounds = array<i64: 8, 128>}]} {
    %0 = tpu.iota {dimensions = array<i32: 1>} : vector<1x128xi32>
    %c128_i32 = arith.constant 128 : i32
    %1 = arith.muli %arg1, %c128_i32 : i32
    %2 = vector.broadcast %1 : i32 to vector<1x128xi32>
    %3 = arith.addi %0, %2 : vector<1x128xi32>
    %c32_i32 = arith.constant 32 : i32
    %4 = vector.broadcast %c32_i32 : i32 to vector<1x128xi32>
    %5 = arith.cmpi slt, %3, %4 : vector<1x128xi32>
    %cst = arith.constant 1.000000e+00 : f32
    %6 = vector.broadcast %cst : f32 to vector<128x128xf32>
    %c0_i32 = arith.constant 0 : i32
    %7 = arith.cmpi eq, %arg0, %c0_i32 : i32
    %c0_i32_0 = arith.constant 0 : i32
    %8 = arith.cmpi eq, %arg1, %c0_i32_0 : i32
    %9 = arith.andi %7, %8 : i1
    %10 = arith.extui %9 : i1 to i32
    %c0_i32_1 = arith.constant 0 : i32
    %11 = arith.cmpi ne, %10, %c0_i32_1 : i32
    scf.if %11 {
      %cst_14 = arith.constant 0.000000e+00 : f32
      %33 = vector.broadcast %cst_14 : f32 to vector<8x128xf32>
      %c0 = arith.constant 0 : index
      %c0_15 = arith.constant 0 : index
      %34 = vector.load %arg14[%c0, %c0_15] : memref<8x128xf32, #tpu.memory_space<vmem>>, vector<8x128xf32>
      tpu.vector_store %arg14[%c0, %c0_15], %33 {strides = array<i32>} : memref<8x128xf32, #tpu.memory_space<vmem>>, vector<8x128xf32>,
      %cst_16 = arith.constant 0.000000e+00 : f32
      %35 = vector.broadcast %cst_16 : f32 to vector<8x128xf32>
      %c0_17 = arith.constant 0 : index
      %c0_18 = arith.constant 0 : index
      %36 = vector.load %arg15[%c0_17, %c0_18] : memref<8x128xf32, #tpu.memory_space<vmem>>, vector<8x128xf32>
      tpu.vector_store %arg15[%c0_17, %c0_18], %35 {strides = array<i32>} : memref<8x128xf32, #tpu.memory_space<vmem>>, vector<8x128xf32>,
    } else {
    }
    %c0_i32_2 = arith.constant 0 : i32
    %12 = arith.cmpi eq, %arg0, %c0_i32_2 : i32
    %13 = arith.extui %12 : i1 to i32
    %c0_i32_3 = arith.constant 0 : i32
    %14 = arith.cmpi ne, %13, %c0_i32_3 : i32
    scf.if %14 {
      %c0 = arith.constant 0 : index
      %c0_14 = arith.constant 0 : index
      %33 = vector.load %arg2[%c0, %c0_14] : memref<8x128xf32, #tpu.memory_space<vmem>>, vector<8x128xf32>
      %c0_15 = arith.constant 0 : index
      %c0_16 = arith.constant 0 : index
      %34 = vector.load %arg14[%c0_15, %c0_16] : memref<8x128xf32, #tpu.memory_space<vmem>>, vector<8x128xf32>
      %cst_17 = arith.constant dense<0.000000e+00> : vector<8x128xf32>
      %35 = tpu.matmul %33, %6, %cst_17 {dimension_numbers = #tpu.dot_dimension_numbers<[1], [0], [0], [1], [0, 0, 1, 1], [], []>} : vector<8x128xf32>, vector<128x128xf32>, vector<8x128xf32> -> vector<8x128xf32>
      %36 = arith.addf %34, %35 : vector<8x128xf32>
      %c0_18 = arith.constant 0 : index
      %c0_19 = arith.constant 0 : index
      %37 = vector.load %arg14[%c0_18, %c0_19] : memref<8x128xf32, #tpu.memory_space<vmem>>, vector<8x128xf32>
      tpu.vector_store %arg14[%c0_18, %c0_19], %36 {strides = array<i32>} : memref<8x128xf32, #tpu.memory_space<vmem>>, vector<8x128xf32>,
      %c0_20 = arith.constant 0 : index
      %c0_21 = arith.constant 0 : index
      %38 = vector.load %arg15[%c0_20, %c0_21] : memref<8x128xf32, #tpu.memory_space<vmem>>, vector<8x128xf32>
      %39 = arith.mulf %33, %33 : vector<8x128xf32>
      %cst_22 = arith.constant dense<0.000000e+00> : vector<8x128xf32>
      %40 = tpu.matmul %39, %6, %cst_22 {dimension_numbers = #tpu.dot_dimension_numbers<[1], [0], [0], [1], [0, 0, 1, 1], [], []>} : vector<8x128xf32>, vector<128x128xf32>, vector<8x128xf32> -> vector<8x128xf32>
      %41 = arith.addf %38, %40 : vector<8x128xf32>
      %c0_23 = arith.constant 0 : index
      %c0_24 = arith.constant 0 : index
      %42 = vector.load %arg15[%c0_23, %c0_24] : memref<8x128xf32, #tpu.memory_space<vmem>>, vector<8x128xf32>
      tpu.vector_store %arg15[%c0_23, %c0_24], %41 {strides = array<i32>} : memref<8x128xf32, #tpu.memory_space<vmem>>, vector<8x128xf32>,
    } else {
    }
    %c0_i32_4 = arith.constant 0 : i32
    %15 = arith.cmpi eq, %arg0, %c0_i32_4 : i32
    %c0_i32_5 = arith.constant 0 : i32
    %16 = arith.cmpi eq, %arg1, %c0_i32_5 : i32
    %17 = arith.andi %15, %16 : i1
    %18 = arith.extui %17 : i1 to i32
    %c0_i32_6 = arith.constant 0 : i32
    %19 = arith.cmpi ne, %18, %c0_i32_6 : i32
    scf.if %19 {
      %c0 = arith.constant 0 : index
      %c0_14 = arith.constant 0 : index
      %33 = vector.load %arg14[%c0, %c0_14] : memref<8x128xf32, #tpu.memory_space<vmem>>, vector<8x128xf32>
      %cst_15 = arith.constant 3.125000e-02 : f32
      %34 = vector.broadcast %cst_15 : f32 to vector<8x128xf32>
      %35 = arith.mulf %33, %34 : vector<8x128xf32>
      %c0_16 = arith.constant 0 : index
      %c0_17 = arith.constant 0 : index
      %36 = vector.load %arg15[%c0_16, %c0_17] : memref<8x128xf32, #tpu.memory_space<vmem>>, vector<8x128xf32>
      %cst_18 = arith.constant 3.125000e-02 : f32
      %37 = vector.broadcast %cst_18 : f32 to vector<8x128xf32>
      %38 = arith.mulf %36, %37 : vector<8x128xf32>
      %39 = arith.mulf %35, %35 : vector<8x128xf32>
      %40 = arith.subf %38, %39 : vector<8x128xf32>
      %cst_19 = arith.constant 0.000000e+00 : f32
      %41 = vector.broadcast %cst_19 : f32 to vector<8x128xf32>
      %42 = arith.maximumf %40, %41 : vector<8x128xf32>
      %c0_20 = arith.constant 0 : index
      %c0_21 = arith.constant 0 : index
      %43 = vector.load %arg4[%c0_20, %c0_21] : memref<8x1xf32, #tpu.memory_space<vmem>>, vector<8x1xf32>
      %cst_22 = arith.constant 9.99999974E-6 : f32
      %44 = vector.broadcast %cst_22 : f32 to vector<8x128xf32>
      %45 = arith.addf %42, %44 : vector<8x128xf32>
      %46 = math.rsqrt %45 : vector<8x128xf32>
      %47 = vector.broadcast %43 : vector<8x1xf32> to vector<8x128xf32>
      %48 = arith.mulf %47, %46 : vector<8x128xf32>
      %c0_23 = arith.constant 0 : index
      %c0_24 = arith.constant 0 : index
      %49 = vector.load %arg10[%c0_23, %c0_24] : memref<8x128xf32, #tpu.memory_space<vmem>>, vector<8x128xf32>
      tpu.vector_store %arg10[%c0_23, %c0_24], %48 {strides = array<i32>} : memref<8x128xf32, #tpu.memory_space<vmem>>, vector<8x128xf32>,
      %c0_25 = arith.constant 0 : index
      %c0_26 = arith.constant 0 : index
      %50 = vector.load %arg5[%c0_25, %c0_26] : memref<8x1xf32, #tpu.memory_space<vmem>>, vector<8x1xf32>
      %51 = arith.mulf %35, %48 : vector<8x128xf32>
      %52 = vector.broadcast %50 : vector<8x1xf32> to vector<8x128xf32>
      %53 = arith.subf %52, %51 : vector<8x128xf32>
      %c0_27 = arith.constant 0 : index
      %c0_28 = arith.constant 0 : index
      %54 = vector.load %arg11[%c0_27, %c0_28] : memref<8x128xf32, #tpu.memory_space<vmem>>, vector<8x128xf32>
      tpu.vector_store %arg11[%c0_27, %c0_28], %53 {strides = array<i32>} : memref<8x128xf32, #tpu.memory_space<vmem>>, vector<8x128xf32>,
    } else {
    }
    %c1_i32 = arith.constant 1 : i32
    %20 = arith.cmpi eq, %arg0, %c1_i32 : i32
    %c0_i32_7 = arith.constant 0 : i32
    %21 = arith.cmpi eq, %arg1, %c0_i32_7 : i32
    %22 = arith.andi %20, %21 : i1
    %23 = arith.extui %22 : i1 to i32
    %c0_i32_8 = arith.constant 0 : i32
    %24 = arith.cmpi ne, %23, %c0_i32_8 : i32
    scf.if %24 {
      %cst_14 = arith.constant 0.000000e+00 : f32
      %33 = vector.broadcast %cst_14 : f32 to vector<8x128xf32>
      %c0 = arith.constant 0 : index
      %c0_15 = arith.constant 0 : index
      %34 = vector.load %arg16[%c0, %c0_15] : memref<8x128xf32, #tpu.memory_space<vmem>>, vector<8x128xf32>
      tpu.vector_store %arg16[%c0, %c0_15], %33 {strides = array<i32>} : memref<8x128xf32, #tpu.memory_space<vmem>>, vector<8x128xf32>,
      %cst_16 = arith.constant 0.000000e+00 : f32
      %35 = vector.broadcast %cst_16 : f32 to vector<8x128xf32>
      %c0_17 = arith.constant 0 : index
      %c0_18 = arith.constant 0 : index
      %36 = vector.load %arg17[%c0_17, %c0_18] : memref<8x128xf32, #tpu.memory_space<vmem>>, vector<8x128xf32>
      tpu.vector_store %arg17[%c0_17, %c0_18], %35 {strides = array<i32>} : memref<8x128xf32, #tpu.memory_space<vmem>>, vector<8x128xf32>,
    } else {
    }
    %c1_i32_9 = arith.constant 1 : i32
    %25 = arith.cmpi eq, %arg0, %c1_i32_9 : i32
    %26 = arith.extui %25 : i1 to i32
    %c0_i32_10 = arith.constant 0 : i32
    %27 = arith.cmpi ne, %26, %c0_i32_10 : i32
    scf.if %27 {
      %c0 = arith.constant 0 : index
      %c0_14 = arith.constant 0 : index
      %33 = vector.load %arg2[%c0, %c0_14] : memref<8x128xf32, #tpu.memory_space<vmem>>, vector<8x128xf32>
      %c16_i32 = arith.constant 16 : i32
      %c0_i32_15 = arith.constant 0 : i32
      %34 = arith.cmpi eq, %c16_i32, %c0_i32_15 : i32
      %c1_i32_16 = arith.constant 1 : i32
      %35 = arith.select %34, %c1_i32_16, %c16_i32 : i32
      %36 = vector.broadcast %35 : i32 to vector<1x128xi32>
      %37 = arith.remsi %3, %36 : vector<1x128xi32>
      %c0_i32_17 = arith.constant 0 : i32
      %38 = vector.broadcast %c0_i32_17 : i32 to vector<1x128xi32>
      %39 = arith.cmpi ne, %37, %38 : vector<1x128xi32>
      %c0_i32_18 = arith.constant 0 : i32
      %40 = vector.broadcast %c0_i32_18 : i32 to vector<1x128xi32>
      %41 = arith.cmpi slt, %37, %40 : vector<1x128xi32>
      %c0_i32_19 = arith.constant 0 : i32
      %42 = arith.cmpi slt, %35, %c0_i32_19 : i32
      %43 = vector.broadcast %42 : i1 to vector<1x128xi1>
      %44 = vector.broadcast %43 : vector<1x128xi1> to vector<1x128xi1>
      %45 = arith.xori %41, %44 : vector<1x128xi1>
      %46 = arith.andi %45, %39 : vector<1x128xi1>
      %47 = vector.broadcast %35 : i32 to vector<1x128xi32>
      %48 = arith.addi %37, %47 : vector<1x128xi32>
      %49 = arith.select %46, %48, %37 : vector<1x128xi1>, vector<1x128xi32>
      %c0_i32_20 = arith.constant 0 : i32
      %50 = vector.broadcast %c0_i32_20 : i32 to vector<1x128xi32>
      %51 = arith.cmpi eq, %49, %50 : vector<1x128xi32>
      %c15_i32 = arith.constant 15 : i32
      %52 = vector.broadcast %c15_i32 : i32 to vector<1x128xi32>
      %53 = arith.cmpi eq, %49, %52 : vector<1x128xi32>
      %c0_21 = arith.constant 0 : index
      %c0_22 = arith.constant 0 : index
      %54 = vector.load %arg10[%c0_21, %c0_22] : memref<8x128xf32, #tpu.memory_space<vmem>>, vector<8x1xf32>
      %c0_23 = arith.constant 0 : index
      %c0_24 = arith.constant 0 : index
      %55 = vector.load %arg11[%c0_23, %c0_24] : memref<8x128xf32, #tpu.memory_space<vmem>>, vector<8x1xf32>
      %c0_25 = arith.constant 0 : index
      %c0_26 = arith.constant 0 : index
      %56 = vector.load %arg3[%c0_25, %c0_26] : memref<8x128xf32, #tpu.memory_space<vmem>>, vector<8x1xf32>
      %c0_27 = arith.constant 0 : index
      %c1 = arith.constant 1 : index
      %57 = vector.load %arg3[%c0_27, %c1] : memref<8x128xf32, #tpu.memory_space<vmem>>, vector<8x1xf32>
      %58 = vector.broadcast %54 : vector<8x1xf32> to vector<8x128xf32>
      %59 = arith.mulf %33, %58 : vector<8x128xf32>
      %60 = vector.broadcast %55 : vector<8x1xf32> to vector<8x128xf32>
      %61 = arith.addf %59, %60 : vector<8x128xf32>
      %cst_28 = arith.constant 0.000000e+00 : f32
      %62 = vector.broadcast %cst_28 : f32 to vector<8x128xf32>
      %63 = arith.cmpf oge, %61, %62 : vector<8x128xf32>
      %cst_29 = arith.constant 0.00999999977 : f32
      %64 = vector.broadcast %cst_29 : f32 to vector<8x128xf32>
      %65 = arith.mulf %64, %61 : vector<8x128xf32>
      %66 = arith.select %63, %61, %65 : vector<8x128xi1>, vector<8x128xf32>
      %67 = arith.mulf %56, %54 : vector<8x1xf32>
      %68 = arith.addf %67, %55 : vector<8x1xf32>
      %cst_30 = arith.constant 0.000000e+00 : f32
      %69 = vector.broadcast %cst_30 : f32 to vector<8x1xf32>
      %70 = arith.cmpf oge, %68, %69 : vector<8x1xf32>
      %cst_31 = arith.constant 0.00999999977 : f32
      %71 = vector.broadcast %cst_31 : f32 to vector<8x1xf32>
      %72 = arith.mulf %71, %68 : vector<8x1xf32>
      %73 = arith.select %70, %68, %72 : vector<8x1xi1>, vector<8x1xf32>
      %74 = arith.mulf %57, %54 : vector<8x1xf32>
      %75 = arith.addf %74, %55 : vector<8x1xf32>
      %cst_32 = arith.constant 0.000000e+00 : f32
      %76 = vector.broadcast %cst_32 : f32 to vector<8x1xf32>
      %77 = arith.cmpf oge, %75, %76 : vector<8x1xf32>
      %cst_33 = arith.constant 0.00999999977 : f32
      %78 = vector.broadcast %cst_33 : f32 to vector<8x1xf32>
      %79 = arith.mulf %78, %75 : vector<8x1xf32>
      %80 = arith.select %77, %75, %79 : vector<8x1xi1>, vector<8x1xf32>
      %c0_i32_34 = arith.constant 0 : i32
      %81 = vector.broadcast %c0_i32_34 : i32 to vector<1x128xi32>
      %82 = arith.cmpi eq, %0, %81 : vector<1x128xi32>
      %c127_i32 = arith.constant 127 : i32
      %83 = vector.broadcast %c127_i32 : i32 to vector<1x128xi32>
      %84 = arith.cmpi eq, %0, %83 : vector<1x128xi32>
      %c1_i32_35 = arith.constant 1 : i32
      %85 = tpu.dynamic_rotate %66 by %c1_i32_35 dim 1 : vector<8x128xf32>, i32 -> vector<8x128xf32>
      %86 = vector.shape_cast %82 : vector<1x128xi1> to vector<1x128xi1>
      %87 = vector.broadcast %86 : vector<1x128xi1> to vector<8x128xi1>
      %88 = vector.shape_cast %73 : vector<8x1xf32> to vector<8x1xf32>
      %89 = vector.broadcast %88 : vector<8x1xf32> to vector<8x128xf32>
      %90 = arith.select %87, %89, %85 : vector<8x128xi1>, vector<8x128xf32>
      %91 = vector.shape_cast %51 : vector<1x128xi1> to vector<1x128xi1>
      %92 = vector.broadcast %91 : vector<1x128xi1> to vector<8x128xi1>
      %93 = arith.select %92, %66, %90 : vector<8x128xi1>, vector<8x128xf32>
      %c127_i32_36 = arith.constant 127 : i32
      %94 = tpu.dynamic_rotate %66 by %c127_i32_36 dim 1 : vector<8x128xf32>, i32 -> vector<8x128xf32>
      %95 = vector.shape_cast %84 : vector<1x128xi1> to vector<1x128xi1>
      %96 = vector.broadcast %95 : vector<1x128xi1> to vector<8x128xi1>
      %97 = vector.shape_cast %80 : vector<8x1xf32> to vector<8x1xf32>
      %98 = vector.broadcast %97 : vector<8x1xf32> to vector<8x128xf32>
      %99 = arith.select %96, %98, %94 : vector<8x128xi1>, vector<8x128xf32>
      %100 = vector.shape_cast %53 : vector<1x128xi1> to vector<1x128xi1>
      %101 = vector.broadcast %100 : vector<1x128xi1> to vector<8x128xi1>
      %102 = arith.select %101, %66, %99 : vector<8x128xi1>, vector<8x128xf32>
      %103 = tpu.concatenate %93, %66, %102 in 0 : vector<8x128xf32>, vector<8x128xf32>, vector<8x128xf32> -> vector<24x128xf32>
      %c0_37 = arith.constant 0 : index
      %c0_38 = arith.constant 0 : index
      %104 = vector.load %arg6[%c0_37, %c0_38] : memref<8x24xf32, #tpu.memory_space<vmem>>, vector<8x24xf32>
      %cst_39 = arith.constant dense<0.000000e+00> : vector<8x128xf32>
      %105 = tpu.matmul %104, %103, %cst_39 {dimension_numbers = #tpu.dot_dimension_numbers<[1], [0], [0], [1], [0, 0, 1, 1], [], []>} : vector<8x24xf32>, vector<24x128xf32>, vector<8x128xf32> -> vector<8x128xf32>
      %c0_40 = arith.constant 0 : index
      %c0_41 = arith.constant 0 : index
      %106 = vector.load %arg7[%c0_40, %c0_41] : memref<8x1xf32, #tpu.memory_space<vmem>>, vector<8x1xf32>
      %107 = vector.broadcast %106 : vector<8x1xf32> to vector<8x128xf32>
      %108 = arith.addf %105, %107 : vector<8x128xf32>
      %cst_42 = arith.constant 0.000000e+00 : f32
      %109 = vector.shape_cast %5 : vector<1x128xi1> to vector<1x128xi1>
      %110 = vector.broadcast %109 : vector<1x128xi1> to vector<8x128xi1>
      %111 = vector.broadcast %cst_42 : f32 to vector<8x128xf32>
      %112 = arith.select %110, %108, %111 : vector<8x128xi1>, vector<8x128xf32>
      %c0_43 = arith.constant 0 : index
      %c0_44 = arith.constant 0 : index
      %113 = vector.load %arg16[%c0_43, %c0_44] : memref<8x128xf32, #tpu.memory_space<vmem>>, vector<8x128xf32>
      %cst_45 = arith.constant dense<0.000000e+00> : vector<8x128xf32>
      %114 = tpu.matmul %112, %6, %cst_45 {dimension_numbers = #tpu.dot_dimension_numbers<[1], [0], [0], [1], [0, 0, 1, 1], [], []>} : vector<8x128xf32>, vector<128x128xf32>, vector<8x128xf32> -> vector<8x128xf32>
      %115 = arith.addf %113, %114 : vector<8x128xf32>
      %c0_46 = arith.constant 0 : index
      %c0_47 = arith.constant 0 : index
      %116 = vector.load %arg16[%c0_46, %c0_47] : memref<8x128xf32, #tpu.memory_space<vmem>>, vector<8x128xf32>
      tpu.vector_store %arg16[%c0_46, %c0_47], %115 {strides = array<i32>} : memref<8x128xf32, #tpu.memory_space<vmem>>, vector<8x128xf32>,
      %c0_48 = arith.constant 0 : index
      %c0_49 = arith.constant 0 : index
      %117 = vector.load %arg17[%c0_48, %c0_49] : memref<8x128xf32, #tpu.memory_space<vmem>>, vector<8x128xf32>
      %118 = arith.mulf %112, %112 : vector<8x128xf32>
      %cst_50 = arith.constant dense<0.000000e+00> : vector<8x128xf32>
      %119 = tpu.matmul %118, %6, %cst_50 {dimension_numbers = #tpu.dot_dimension_numbers<[1], [0], [0], [1], [0, 0, 1, 1], [], []>} : vector<8x128xf32>, vector<128x128xf32>, vector<8x128xf32> -> vector<8x128xf32>
      %120 = arith.addf %117, %119 : vector<8x128xf32>
      %c0_51 = arith.constant 0 : index
      %c0_52 = arith.constant 0 : index
      %121 = vector.load %arg17[%c0_51, %c0_52] : memref<8x128xf32, #tpu.memory_space<vmem>>, vector<8x128xf32>
      tpu.vector_store %arg17[%c0_51, %c0_52], %120 {strides = array<i32>} : memref<8x128xf32, #tpu.memory_space<vmem>>, vector<8x128xf32>,
    } else {
    }
    %c1_i32_11 = arith.constant 1 : i32
    %28 = arith.cmpi eq, %arg0, %c1_i32_11 : i32
    %c0_i32_12 = arith.constant 0 : i32
    %29 = arith.cmpi eq, %arg1, %c0_i32_12 : i32
    %30 = arith.andi %28, %29 : i1
    %31 = arith.extui %30 : i1 to i32
    %c0_i32_13 = arith.constant 0 : i32
    %32 = arith.cmpi ne, %31, %c0_i32_13 : i32
    scf.if %32 {
      %c0 = arith.constant 0 : index
      %c0_14 = arith.constant 0 : index
      %33 = vector.load %arg16[%c0, %c0_14] : memref<8x128xf32, #tpu.memory_space<vmem>>, vector<8x128xf32>
      %cst_15 = arith.constant 3.125000e-02 : f32
      %34 = vector.broadcast %cst_15 : f32 to vector<8x128xf32>
      %35 = arith.mulf %33, %34 : vector<8x128xf32>
      %c0_16 = arith.constant 0 : index
      %c0_17 = arith.constant 0 : index
      %36 = vector.load %arg17[%c0_16, %c0_17] : memref<8x128xf32, #tpu.memory_space<vmem>>, vector<8x128xf32>
      %cst_18 = arith.constant 3.125000e-02 : f32
      %37 = vector.broadcast %cst_18 : f32 to vector<8x128xf32>
      %38 = arith.mulf %36, %37 : vector<8x128xf32>
      %39 = arith.mulf %35, %35 : vector<8x128xf32>
      %40 = arith.subf %38, %39 : vector<8x128xf32>
      %cst_19 = arith.constant 0.000000e+00 : f32
      %41 = vector.broadcast %cst_19 : f32 to vector<8x128xf32>
      %42 = arith.maximumf %40, %41 : vector<8x128xf32>
      %c0_20 = arith.constant 0 : index
      %c0_21 = arith.constant 0 : index
      %43 = vector.load %arg8[%c0_20, %c0_21] : memref<8x1xf32, #tpu.memory_space<vmem>>, vector<8x1xf32>
      %cst_22 = arith.constant 9.99999974E-6 : f32
      %44 = vector.broadcast %cst_22 : f32 to vector<8x128xf32>
      %45 = arith.addf %42, %44 : vector<8x128xf32>
      %46 = math.rsqrt %45 : vector<8x128xf32>
      %47 = vector.broadcast %43 : vector<8x1xf32> to vector<8x128xf32>
      %48 = arith.mulf %47, %46 : vector<8x128xf32>
      %c0_23 = arith.constant 0 : index
      %c0_24 = arith.constant 0 : index
      %49 = vector.load %arg12[%c0_23, %c0_24] : memref<8x128xf32, #tpu.memory_space<vmem>>, vector<8x128xf32>
      tpu.vector_store %arg12[%c0_23, %c0_24], %48 {strides = array<i32>} : memref<8x128xf32, #tpu.memory_space<vmem>>, vector<8x128xf32>,
      %c0_25 = arith.constant 0 : index
      %c0_26 = arith.constant 0 : index
      %50 = vector.load %arg9[%c0_25, %c0_26] : memref<8x1xf32, #tpu.memory_space<vmem>>, vector<8x1xf32>
      %51 = arith.mulf %35, %48 : vector<8x128xf32>
      %52 = vector.broadcast %50 : vector<8x1xf32> to vector<8x128xf32>
      %53 = arith.subf %52, %51 : vector<8x128xf32>
      %c0_27 = arith.constant 0 : index
      %c0_28 = arith.constant 0 : index
      %54 = vector.load %arg13[%c0_27, %c0_28] : memref<8x128xf32, #tpu.memory_space<vmem>>, vector<8x128xf32>
      tpu.vector_store %arg13[%c0_27, %c0_28], %53 {strides = array<i32>} : memref<8x128xf32, #tpu.memory_space<vmem>>, vector<8x128xf32>,
    } else {
    }
    return
  }
  func.func @transform_0(%arg0: i32, %arg1: i32) -> (i32, i32) {
    %c0_i32 = arith.constant 0 : i32
    %c0_i32_0 = arith.constant 0 : i32
    return %c0_i32, %arg1 : i32, i32
  }
  func.func @transform_1(%arg0: i32, %arg1: i32) -> (i32, i32) {
    %c0_i32 = arith.constant 0 : i32
    %c0_i32_0 = arith.constant 0 : i32
    return %c0_i32, %arg1 : i32, i32
  }
  func.func @transform_2(%arg0: i32, %arg1: i32) -> (i32, i32) {
    %c0_i32 = arith.constant 0 : i32
    %c0_i32_0 = arith.constant 0 : i32
    %c0_i32_1 = arith.constant 0 : i32
    return %c0_i32, %c0_i32_0 : i32, i32
  }
  func.func @transform_3(%arg0: i32, %arg1: i32) -> (i32, i32) {
    %c0_i32 = arith.constant 0 : i32
    %c0_i32_0 = arith.constant 0 : i32
    %c0_i32_1 = arith.constant 0 : i32
    return %c0_i32, %c0_i32_0 : i32, i32
  }
  func.func @transform_4(%arg0: i32, %arg1: i32) -> (i32, i32) {
    %c0_i32 = arith.constant 0 : i32
    %c0_i32_0 = arith.constant 0 : i32
    %c0_i32_1 = arith.constant 0 : i32
    return %c0_i32, %c0_i32_0 : i32, i32
  }
  func.func @transform_5(%arg0: i32, %arg1: i32) -> (i32, i32) {
    %c0_i32 = arith.constant 0 : i32
    %c0_i32_0 = arith.constant 0 : i32
    %c0_i32_1 = arith.constant 0 : i32
    return %c0_i32, %c0_i32_0 : i32, i32
  }
  func.func @transform_6(%arg0: i32, %arg1: i32) -> (i32, i32) {
    %c0_i32 = arith.constant 0 : i32
    %c0_i32_0 = arith.constant 0 : i32
    %c0_i32_1 = arith.constant 0 : i32
    return %c0_i32, %c0_i32_0 : i32, i32
  }
  func.func @transform_7(%arg0: i32, %arg1: i32) -> (i32, i32) {
    %c0_i32 = arith.constant 0 : i32
    %c0_i32_0 = arith.constant 0 : i32
    %c0_i32_1 = arith.constant 0 : i32
    return %c0_i32, %c0_i32_0 : i32, i32
  }
  func.func @transform_8(%arg0: i32, %arg1: i32) -> (i32, i32) {
    %c0_i32 = arith.constant 0 : i32
    %c0_i32_0 = arith.constant 0 : i32
    %c0_i32_1 = arith.constant 0 : i32
    return %c0_i32, %c0_i32_0 : i32, i32
  }
  func.func @transform_9(%arg0: i32, %arg1: i32) -> (i32, i32) {
    %c0_i32 = arith.constant 0 : i32
    %c0_i32_0 = arith.constant 0 : i32
    %c0_i32_1 = arith.constant 0 : i32
    return %c0_i32, %c0_i32_0 : i32, i32
  }
  func.func @transform_10(%arg0: i32, %arg1: i32) -> (i32, i32) {
    %c0_i32 = arith.constant 0 : i32
    %c0_i32_0 = arith.constant 0 : i32
    %c0_i32_1 = arith.constant 0 : i32
    return %c0_i32, %c0_i32_0 : i32, i32
  }
  func.func @transform_11(%arg0: i32, %arg1: i32) -> (i32, i32) {
    %c0_i32 = arith.constant 0 : i32
    %c0_i32_0 = arith.constant 0 : i32
    %c0_i32_1 = arith.constant 0 : i32
    return %c0_i32, %c0_i32_0 : i32, i32
  }
}

</mosaic_0001>

<bundles_post_ra>
// kernel: tpu_custom_call.1
= control target key start
LH: loop header
LB: loop body
LE: loop exit
PB: predicated region body
PF: predicated region fallthrough
CT: control target
= control target key end

     0   :  { %17 = vsyncpa [#allocation7], 0  ;;  %s1874_s0 = inlined_call_operand.vmem [shape: f32[8,128], index: 0, kind: input, shape index: {}]   ;;  %s1875_s1 = inlined_call_operand.vmem [shape: f32[8,128], index: 1, kind: input, shape index: {}]   ;;  %s1876_s2 = inlined_call_operand.vmem [shape: f32[8,1], index: 2, kind: input, shape index: {}]   ;;  %s1877_s3 = inlined_call_operand.vmem [shape: f32[8,1], index: 3, kind: input, shape index: {}]   ;;  %s1878_s4 = inlined_call_operand.vmem [shape: f32[8,24], index: 4, kind: input, shape index: {}]   ;;  %s1879_s5 = inlined_call_operand.vmem [shape: f32[8,1], index: 5, kind: input, shape index: {}]   ;;  %s1880_s6 = inlined_call_operand.vmem [shape: f32[8,1], index: 6, kind: input, shape index: {}]   ;;  %s1881_s7 = inlined_call_operand.vmem [shape: f32[8,1], index: 7, kind: input, shape index: {}]   ;;  %s1882_s8 = inlined_call_operand.hbm [shape: f32[8,128], index: 8, kind: output, shape index: {0}]   ;;  %s1883_s9 = inlined_call_operand.hbm [shape: f32[8,128], index: 9, kind: output, shape index: {1}]   ;;  %s1884_s10 = inlined_call_operand.hbm [shape: f32[8,128], index: 10, kind: output, shape index: {2}]   ;;  %s1885_s11 = inlined_call_operand.hbm [shape: f32[8,128], index: 11, kind: output, shape index: {3}]  }
   0x1   :  { %18 = vsyncpa [#allocation9], 0 }
   0x2   :  { %19 = vsyncpa [#allocation12], 0  ;;  %s1600_s17 = smov 0   ;;  %s1602_s18 = smov 0  }
   0x3   :  { %s1604_s19 = smov 0  }
   0x4 LB: > { %s1070_s20 = sadd.s32 4294967295, %s1520_s19   ;;  %s37_s21 = sadd.s32 1, %s1516_s18  ;;  %s1520_s19 = sphi %s1604_s19, %s25_s19   ;;  %s1516_s18 = sphi %s1602_s18, %s1888_s18   ;;  %s1512_s17 = sphi %s1600_s17, %s1887_s17  }
   0x5   : > { %p39_p0 = scmp.ge.s32.totalorder %s37_s21, 2  ;;  %p1074_p1 = scmp.ge.s32.totalorder %s1520_s19, 1 }
   0x6   : > { %p347_p2 = scmp.lt.s32.totalorder %s1520_s19, 3 }
   0x7   : > { %s1890_s21 = smov (%p39_p0, %s37_s21), 0 }
   0x8   : > { %p348_p3 = pnand %p1074_p1, %p347_p2 }
   0x9   : > { %p399_p4 = scmp.eq.s32.totalorder (!%p348_p3), %s1512_s17, 0 }
   0xa   : > { %351 = sbr.rel (%p348_p3) target bundleno = 1255 (0x4e7), region = 52 }
   0xf   : > { %v393_v0 = vlaneseq  ;;  %404 = sbr.rel (!%p399_p4) target bundleno = 20 (0x14), region = 56  ;;  %v1522_v2 = vmov (%p399_p4), 0.0  }
  0x10   : > { %405 = vst [vmem:[#allocation2] sm:$0xff] (%p399_p4), %v1522_v2  ;;  %406 = vst [vmem:[#allocation3] sm:$0xff] (%p399_p4), %v1522_v2 }
  0x11   : > { %v1622_v1 = vand.u32 127, %v393_v0 }
  0x13   : > { %vm398_vm0 = vcmp.lt.s32.totalorder %v1622_v1, 32 }
  0x14 PF: > { %p1076_p5 = scmp.ne.s32.totalorder %s1512_s17, 0 }
  0x16   : > { %409 = sbr.rel (%p1076_p5) target bundleno = 257 (0x101), region = 60 }
  0x1b   : > { %v1523_v3 = vmov 0.0   ;;  %v1524_v4 = vmov 1.0   ;;  %v410_v5 = vld [vmem:[%s1874_s0] sm:$0xff]  ;;  %vm1525_vm1 = vmmov 0   ;;  %v484_v8 = vld [vmem:[#allocation3] sm:$0xff] }
  0x1c   : > { %1165 = vmatprep.subr.mxu0 %v1523_v3  ;;  %1200 = vmatprep.subr.mxu1 %v1523_v3  ;;  %v485_v6 = vmul.f32 %v410_v5, %v410_v5  ;;  %v411_v7 = vld [vmem:[#allocation2] sm:$0xff] }
  0x1d   : > { %1166 = vmatpush3.msra.mxu0 %v1524_v4  ;;  %1201 = vmatpush3.msra.mxu1 %v1524_v4 }
  0x1e   : > { %1167 = vmatprep.subr.mxu0 %v1523_v3  ;;  %1202 = vmatprep.subr.mxu1 %v1523_v3 }
  0x1f   : > { %1168 = vmatpush3.msra.mxu0 %v1524_v4  ;;  %1203 = vmatpush3.msra.mxu1 %v1524_v4 }
  0x20   : > { %1169 = vmatprep.subr.mxu0 %v1523_v3  ;;  %1204 = vmatprep.subr.mxu1 %v1523_v3 }
  0x21   : > { %1170 = vmatpush3.msra.mxu0 %v1524_v4  ;;  %1205 = vmatpush3.msra.mxu1 %v1524_v4 }
  0x22   : > { %1171 = vmatprep.subr.mxu0 %v1523_v3  ;;  %1206 = vmatprep.subr.mxu1 %v1523_v3 }
  0x23   : > { %1172 = vmatpush3.msra.mxu0 %v1524_v4  ;;  %1207 = vmatpush3.msra.mxu1 %v1524_v4 }
  0x24   : > { %1173 = vmatprep.subr.mxu0 %v1523_v3  ;;  %1208 = vmatprep.subr.mxu1 %v1523_v3 }
  0x25   : > { %1174 = vmatpush3.msra.mxu0 %v1524_v4  ;;  %1209 = vmatpush3.msra.mxu1 %v1524_v4 }
  0x26   : > { %1175 = vmatprep.subr.mxu0 %v1523_v3  ;;  %1210 = vmatprep.subr.mxu1 %v1523_v3 }
  0x27   : > { %1176 = vmatpush3.msra.mxu0 %v1524_v4  ;;  %1211 = vmatpush3.msra.mxu1 %v1524_v4 }
  0x28   : > { %1177 = vmatprep.subr.mxu0 %v1523_v3  ;;  %1212 = vmatprep.subr.mxu1 %v1523_v3 }
  0x29   : > { %1178 = vmatpush3.msra.mxu0 %v1524_v4  ;;  %1213 = vmatpush3.msra.mxu1 %v1524_v4 }
  0x2a   : > { %1179 = vmatprep.subr.mxu0 %v1523_v3  ;;  %1214 = vmatprep.subr.mxu1 %v1523_v3 }
  0x2b   : > { %1180 = vmatpush3.msra.mxu0 %v1524_v4  ;;  %1215 = vmatpush3.msra.mxu1 %v1524_v4 }
  0x2c   : > { %1181 = vmatprep.subr.mxu0 %v1523_v3  ;;  %1216 = vmatprep.subr.mxu1 %v1523_v3 }
  0x2d   : > { %1182 = vmatpush3.msra.mxu0 %v1524_v4  ;;  %1217 = vmatpush3.msra.mxu1 %v1524_v4 }
  0x2e   : > { %1183 = vmatprep.subr.mxu0 %v1523_v3  ;;  %1218 = vmatprep.subr.mxu1 %v1523_v3 }
  0x2f   : > { %1184 = vmatpush3.msra.mxu0 %v1524_v4  ;;  %1219 = vmatpush3.msra.mxu1 %v1524_v4 }
  0x30   : > { %1185 = vmatprep.subr.mxu0 %v1523_v3  ;;  %1220 = vmatprep.subr.mxu1 %v1523_v3 }
  0x31   : > { %1186 = vmatpush3.msra.mxu0 %v1524_v4  ;;  %1221 = vmatpush3.msra.mxu1 %v1524_v4 }
  0x32   : > { %1187 = vmatprep.subr.mxu0 %v1523_v3  ;;  %1222 = vmatprep.subr.mxu1 %v1523_v3 }
  0x33   : > { %1188 = vmatpush3.msra.mxu0 %v1524_v4  ;;  %1223 = vmatpush3.msra.mxu1 %v1524_v4 }
  0x34   : > { %1189 = vmatprep.subr.mxu0 %v1523_v3  ;;  %1224 = vmatprep.subr.mxu1 %v1523_v3 }
  0x35   : > { %1190 = vmatpush3.msra.mxu0 %v1524_v4  ;;  %1225 = vmatpush3.msra.mxu1 %v1524_v4 }
  0x36   : > { %1191 = vmatprep.subr.mxu0 %v1523_v3  ;;  %1226 = vmatprep.subr.mxu1 %v1523_v3 }
  0x37   : > { %1192 = vmatpush3.msra.mxu0 %v1524_v4  ;;  %1227 = vmatpush3.msra.mxu1 %v1524_v4 }
  0x38   : > { %1193 = vmatprep.subr.mxu0 %v1523_v3  ;;  %1228 = vmatprep.subr.mxu1 %v1523_v3 }
  0x39   : > { %1194 = vmatpush3.msra.mxu0 %v1524_v4  ;;  %1229 = vmatpush3.msra.mxu1 %v1524_v4 }
  0x3a   : > { %1195 = vmatprep.subr.mxu0 %v1523_v3  ;;  %1230 = vmatprep.subr.mxu1 %v1523_v3 }
  0x3b   : > { %1196 = vmatpush3.msra.mxu0 %v1524_v4  ;;  %1197 = vmatprep.mubr.msk.f32.mxu0 %vm1525_vm1, %v1523_v3 }
  0x3c   : > { %1231 = vmatpush3.msra.mxu1 %v1524_v4  ;;  %1232 = vmatprep.mubr.msk.f32.mxu1 %vm1525_vm1, %v1523_v3 }
  0x3d   : > { %1198 = vmatmul.mubr.f32.vlgmr.msra.gmra.mxu0 %v410_v5  ;;  %1233 = vmatmul.mubr.f32.vlgmr.msra.gmra.mxu1 %v485_v6 }
  0xfd   : > { %v478_v9 = vpop.f32.mrf.mxu0  ;;  %v552_v10 = vpop.f32.mrf.mxu1 }
  0xfe   : > { %v482_v11 = vadd.f32 %v478_v9, %v411_v7  ;;  %v556_v12 = vadd.f32 %v552_v10, %v484_v8 }
  0xff   : > { %v1199_v13 = vpop.f32.mrf.mxu0  ;;  %v1234_v14 = vpop.f32.mrf.mxu1 }
 0x100   : > { %483 = vst [vmem:[#allocation2] sm:$0xff] %v482_v11  ;;  %557 = vst [vmem:[#allocation3] sm:$0xff] %v556_v12 }
 0x101 PF: > { %559 = sbr.rel (!%p399_p4) target bundleno = 390 (0x186), region = 64  ;;  %v567_v15 = vld [vmem:[%s1876_s2] sm:$0xff] (%p399_p4)  ;;  %v1526_v16 = vmov (%p399_p4), 0  }
 0x102   : > { %1380 = vset.pattern.permute.xlu0 (%p399_p4), %v1526_v16  ;;  %v577_v17 = vld [vmem:[%s1877_s3] sm:$0xff] (%p399_p4) }
 0x103   : > { %572 = vperm.xlu0 (%p399_p4), %1380, %v567_v15  }
 0x107   : > { %581 = vperm.xlu0 %1380, %v577_v17   ;;  %v560_v18 = vld [vmem:[#allocation2] sm:$0xff]  ;;  %v562_v20 = vld [vmem:[#allocation3] sm:$0xff] }
 0x108   : > { %v561_v19 = vmul.f32 0.03125, %v560_v18  ;;  %v563_v21 = vmul.f32 0.03125, %v562_v20 }
 0x10a   : > { %v564_v22 = vmul.f32 %v561_v19, %v561_v19 }
 0x10c   : > { %v565_v23 = vsub.f32 %v563_v21, %v564_v22 }
 0x10e   : > { %v566_v24 = vmax.f32 %v565_v23, 0.0 }
 0x110   : > { %v568_v25 = vadd.f32 1e-05, %v566_v24 }
 0x112   : > { %1381 = vrsqrt.f32 %v568_v25 }
 0x11f   : > { %v1382_v26 = vpop.eup %1381 }
 0x17e   : > { %v573_v27 = vpop.permute.xlu0 %572 }
 0x17f   : > { %v575_v28 = vmul.f32 %v1382_v26, %v573_v27 }
 0x181   : > { %576 = vst [vmem:[#allocation6] sm:$0xff] %v575_v28  ;;  %v578_v29 = vmul.f32 %v575_v28, %v561_v19 }
 0x182   : > { %v582_v30 = vpop.permute.xlu0 %581 }
 0x183   : > { %v584_v31 = vsub.f32 %v582_v30, %v578_v29 }
 0x185   : > { %585 = vst [vmem:[#allocation8] sm:$0xff] %v584_v31 }
 0x186 PF: > { %p586_p6 = scmp.eq.s32.totalorder %s1512_s17, 1 }
 0x187   : > { %v1527_v32 = vmov (%p586_p6), 0.0  }
 0x188   : > { %590 = sbr.rel (!%p586_p6) target bundleno = 397 (0x18d), region = 68  ;;  %591 = vst [vmem:[#allocation4] sm:$0xff] (%p586_p6), %v1527_v32  ;;  %592 = vst [vmem:[#allocation5] sm:$0xff] (%p586_p6), %v1527_v32 }
 0x18d PF: > { %p1078_p7 = scmp.ne.s32.totalorder %s1512_s17, 1 }
 0x18e   : > { %s1529_s30 = smov (!%p1078_p7), 1   ;;  %s1531_s14 = smov (!%p1078_p7), 127  }
 0x18f   : > { %595 = sbr.rel (%p1078_p7) target bundleno = 1066 (0x42a), region = 72 }
 0x194   : > { %v612_v33 = vld [vmem:[#allocation8] sm:$0xff]  ;;  %v611_v34 = vld [vmem:[#allocation6] sm:$0xff]  ;;  %v1528_v36 = vmov 0   ;;  %v1530_v41 = vmov 1   ;;  %v1532_v55 = vmov 0.0   ;;  %vm1533_vm5 = vmmov 0  }
 0x195   : > { %v613_v35 = vld [vmem:[%s1875_s1] sm:$0xff]  ;;  %1384 = vset.pattern.permute.xlu1 %v1528_v36  ;;  %1383 = vset.pattern.permute.xlu0 %v1528_v36  ;;  %v1534_v57 = vmov 1.0   ;;  %v601_v58 = vand.u32 15, %v1622_v1  ;;  %vm646_vm6 = vcmp.eq.s32.totalorder %v1622_v1, 127  ;;  %vm645_vm8 = vcmp.eq.s32.totalorder %v1622_v1, 0  ;;  %v757_v11 = vld [vmem:[#allocation4] sm:$0xff] }
 0x196   : > { %v629_v37 = vmul.f32 %v613_v35, %v611_v34  ;;  %622 = vperm.xlu1 %1384, %v612_v33   ;;  %616 = vperm.xlu0 %1383, %v611_v34   ;;  %v596_v42 = vld [vmem:[%s1874_s0] sm:$0xff]  ;;  %vm680_vm10 = vcmask 195584   ;;  %v830_v14 = vld [vmem:[#allocation5] sm:$0xff] }
 0x197   : > { %v674_v54 = vld [vmem:[%s1879_s5] sm:$0xff]  ;;  %1235 = vmatprep.subr.mxu0 %v1532_v55  ;;  %1244 = vmatprep.subr.mxu1 %v1532_v55  ;;  %vm610_vm7 = vcmp.eq.s32.totalorder %v601_v58, 15  ;;  %vm609_vm9 = vcmp.eq.s32.totalorder %v601_v58, 0 }
 0x198   : > { %v630_v38 = vadd.f32 %v629_v37, %v612_v33  ;;  %1241 = vmatprep.mubr.msk.f32.mxu0 %vm1533_vm5, %v1532_v55  ;;  %1276 = vmatprep.mubr.msk.f32.mxu1 %vm1533_vm5, %v1532_v55  ;;  %v673_v3 = vld [vmem:[%s1878_s4] sm:$0xff] }
 0x199   : > { %1245 = vmatpush3.msra.mxu1 %v1534_v57 }
 0x19a   : > { %vm631_vm2 = vcmp.ge.f32.partialorder %v630_v38, 0.0  ;;  %v632_v39 = vmul.f32 0.01, %v630_v38  ;;  %638 = vrot.lane.b32.xlu1 %v612_v33, %s1529_s30  ;;  %634 = vrot.lane.b32.xlu0 %v611_v34, %s1529_s30 }
 0x19b   : > { %1385 = vset.pattern.permute.xlu0 %v1530_v41  ;;  %1246 = vmatprep.subr.mxu1 %v1532_v55 }
 0x19c   : > { %v633_v40 = vsel %vm631_vm2, %v630_v38, %v632_v39  ;;  %1247 = vmatpush3.msra.mxu1 %v1534_v57 }
 0x19d   : > { %1248 = vmatprep.subr.mxu1 %v1532_v55 }
 0x19e   : > { %653 = vperm.xlu1 %1384, %v633_v40   ;;  %1249 = vmatpush3.msra.mxu1 %v1534_v57 }
 0x19f   : > { %1250 = vmatprep.subr.mxu1 %v1532_v55 }
 0x1a0   : > { %1251 = vmatpush3.msra.mxu1 %v1534_v57 }
 0x1a1   : > { %1252 = vmatprep.subr.mxu1 %v1532_v55 }
 0x1a2   : > { %1253 = vmatpush3.msra.mxu1 %v1534_v57 }
 0x1a3   : > { %1254 = vmatprep.subr.mxu1 %v1532_v55 }
 0x1a4   : > { %1255 = vmatpush3.msra.mxu1 %v1534_v57 }
 0x1a5   : > { %1256 = vmatprep.subr.mxu1 %v1532_v55 }
 0x1a6   : > { %1257 = vmatpush3.msra.mxu1 %v1534_v57 }
 0x1a7   : > { %1258 = vmatprep.subr.mxu1 %v1532_v55 }
 0x1a8   : > { %1259 = vmatpush3.msra.mxu1 %v1534_v57 }
 0x1a9   : > { %1260 = vmatprep.subr.mxu1 %v1532_v55 }
 0x1aa   : > { %1261 = vmatpush3.msra.mxu1 %v1534_v57 }
 0x1ab   : > { %1262 = vmatprep.subr.mxu1 %v1532_v55 }
 0x1ac   : > { %1263 = vmatpush3.msra.mxu1 %v1534_v57 }
 0x1ad   : > { %1264 = vmatprep.subr.mxu1 %v1532_v55 }
 0x1ae   : > { %1265 = vmatpush3.msra.mxu1 %v1534_v57 }
 0x1af   : > { %1266 = vmatprep.subr.mxu1 %v1532_v55 }
 0x1b0   : > { %1267 = vmatpush3.msra.mxu1 %v1534_v57 }
 0x1b1   : > { %1268 = vmatprep.subr.mxu1 %v1532_v55 }
 0x1b2   : > { %1269 = vmatpush3.msra.mxu1 %v1534_v57 }
 0x1b3   : > { %1270 = vmatprep.subr.mxu1 %v1532_v55 }
 0x1b4   : > { %1271 = vmatpush3.msra.mxu1 %v1534_v57 }
 0x1b5   : > { %1272 = vmatprep.subr.mxu1 %v1532_v55 }
 0x1b6   : > { %1273 = vmatpush3.msra.mxu1 %v1534_v57 }
 0x1b7   : > { %1274 = vmatprep.subr.mxu1 %v1532_v55 }
 0x1b8   : > { %1275 = vmatpush3.msra.mxu1 %v1534_v57 }
 0x211   : > { %v623_v43 = vpop.permute.xlu1 %622  ;;  %v617_v44 = vpop.permute.xlu0 %616 }
 0x212   : > { %v619_v45 = vmul.f32 %v617_v44, %v596_v42 }
 0x214   : > { %v625_v46 = vadd.f32 %v623_v43, %v619_v45 }
 0x215   : > { %v635_v47 = vpop.permute.xlu0 %634  ;;  %v639_v50 = vpop.permute.xlu1 %638 }
 0x216   : > { %vm626_vm3 = vcmp.ge.f32.partialorder %v625_v46, 0.0  ;;  %v627_v48 = vmul.f32 0.01, %v625_v46  ;;  %v637_v49 = vmul.f32 %v635_v47, %v613_v35 }
 0x218   : > { %v641_v51 = vadd.f32 %v639_v50, %v637_v49  ;;  %v1717_v52 = vsel %vm626_vm3, %v625_v46, %v627_v48 }
 0x219   : > { %660 = vrot.lane.b32.xlu1 %v1717_v52, %s1531_s14  ;;  %v654_v59 = vpop.permute.xlu1 %653 }
 0x21a   : > { %vm642_vm4 = vcmp.ge.f32.partialorder %v641_v51, 0.0  ;;  %v643_v53 = vmul.f32 0.01, %v641_v51 }
 0x21c   : > { %v644_v56 = vsel %vm642_vm4, %v641_v51, %v643_v53 }
 0x21d   : > { %666 = vperm.xlu0 %1385, %v644_v56   ;;  %677 = vperm.xlu1 %1384, %v674_v54  }
 0x221   : > { %647 = vrot.lane.b32.xlu0 %v1717_v52, %s1529_s30 }
 0x222   : > { %1386 = vset.pattern.permute.xlu0 %v1528_v36 }
 0x28b   : > { %v661_v60 = vpop.permute.xlu1 %660 }
 0x298   : > { %v667_v61 = vpop.permute.xlu0 %666  ;;  %v678_v5 = vpop.permute.xlu1 %677 }
 0x299   : > { %v669_v62 = vsel %vm646_vm6, %v667_v61, %v661_v60 }
 0x29a   : > { %v672_v63 = vsel %vm610_vm7, %v1717_v52, %v669_v62 }
 0x29b   : > { %1236 = vmatpush3.msra.mxu0 %v672_v63 }
 0x29c   : > { %v648_v0 = vpop.permute.xlu0 %647  ;;  %1237 = vmatprep.subr.mxu0 %v1532_v55 }
 0x29d   : > { %v656_v2 = vsel %vm645_vm8, %v654_v59, %v648_v0  ;;  %1238 = vmatpush3.msra.mxu0 %v1717_v52 }
 0x29e   : > { %1239 = vmatprep.subr.mxu0 %v1532_v55  ;;  %v659_v4 = vsel %vm609_vm9, %v1717_v52, %v656_v2 }
 0x29f   : > { %1240 = vmatpush3.msra.mxu0 %v659_v4 }
 0x2a0   : > { %1242 = vmatmul.mubr.msk.f32.vlgmr.msra.gmra.mxu0 %vm680_vm10, %v673_v3  ;;  %1279 = vmatprep.subr.mxu0 %v1532_v55 }
 0x2a1   : > { %1280 = vmatpush3.msra.mxu0 %v1534_v57  ;;  %1311 = vmatprep.mubr.msk.f32.mxu0 %vm1533_vm5, %v1532_v55 }
 0x2a2   : > { %1281 = vmatprep.subr.mxu0 %v1532_v55 }
 0x2a3   : > { %1282 = vmatpush3.msra.mxu0 %v1534_v57 }
 0x2a4   : > { %1283 = vmatprep.subr.mxu0 %v1532_v55 }
 0x2a5   : > { %1284 = vmatpush3.msra.mxu0 %v1534_v57 }
 0x2a6   : > { %1285 = vmatprep.subr.mxu0 %v1532_v55 }
 0x2a7   : > { %1286 = vmatpush3.msra.mxu0 %v1534_v57 }
 0x2a8   : > { %1287 = vmatprep.subr.mxu0 %v1532_v55 }
 0x2a9   : > { %1288 = vmatpush3.msra.mxu0 %v1534_v57 }
 0x2aa   : > { %1289 = vmatprep.subr.mxu0 %v1532_v55 }
 0x2ab   : > { %1290 = vmatpush3.msra.mxu0 %v1534_v57 }
 0x2ac   : > { %1291 = vmatprep.subr.mxu0 %v1532_v55 }
 0x2ad   : > { %1292 = vmatpush3.msra.mxu0 %v1534_v57 }
 0x2ae   : > { %1293 = vmatprep.subr.mxu0 %v1532_v55 }
 0x2af   : > { %1294 = vmatpush3.msra.mxu0 %v1534_v57 }
 0x2b0   : > { %1295 = vmatprep.subr.mxu0 %v1532_v55 }
 0x2b1   : > { %1296 = vmatpush3.msra.mxu0 %v1534_v57 }
 0x2b2   : > { %1297 = vmatprep.subr.mxu0 %v1532_v55 }
 0x2b3   : > { %1298 = vmatpush3.msra.mxu0 %v1534_v57 }
 0x2b4   : > { %1299 = vmatprep.subr.mxu0 %v1532_v55 }
 0x2b5   : > { %1300 = vmatpush3.msra.mxu0 %v1534_v57 }
 0x2b6   : > { %1301 = vmatprep.subr.mxu0 %v1532_v55 }
 0x2b7   : > { %1302 = vmatpush3.msra.mxu0 %v1534_v57 }
 0x2b8   : > { %1303 = vmatprep.subr.mxu0 %v1532_v55 }
 0x2b9   : > { %1304 = vmatpush3.msra.mxu0 %v1534_v57 }
 0x2ba   : > { %1305 = vmatprep.subr.mxu0 %v1532_v55 }
 0x2bb   : > { %1306 = vmatpush3.msra.mxu0 %v1534_v57 }
 0x2bc   : > { %1307 = vmatprep.subr.mxu0 %v1532_v55 }
 0x2bd   : > { %1308 = vmatpush3.msra.mxu0 %v1534_v57 }
 0x2be   : > { %1309 = vmatprep.subr.mxu0 %v1532_v55 }
 0x2bf   : > { %1310 = vmatpush3.msra.mxu0 %v1534_v57 }
 0x360   : > { %v750_v6 = vpop.f32.mrf.mxu0 }
 0x361   : > { %v751_v7 = vadd.f32 %v750_v6, %v678_v5 }
 0x362   : > { %v1243_v8 = vpop.f32.mrf.mxu0 }
 0x363   : > { %v756_v9 = vsel %vm398_vm0, %v751_v7, 0.0  ;;  %1277 = vmatmul.mubr.msk.f32.vlgmr.msra.gmra.mxu1 %vm398_vm0, %v751_v7 }
 0x364   : > { %v831_v10 = vmul.f32 %v756_v9, %v756_v9 }
 0x366   : > { %1312 = vmatmul.mubr.f32.vlgmr.msra.gmra.mxu0 %v831_v10 }
 0x423   : > { %v824_v12 = vpop.f32.mrf.mxu1 }
 0x424   : > { %v828_v13 = vadd.f32 %v824_v12, %v757_v11 }
 0x425   : > { %v1278_v15 = vpop.f32.mrf.mxu1 }
 0x426   : > { %829 = vst [vmem:[#allocation4] sm:$0xff] %v828_v13  ;;  %v898_v16 = vpop.f32.mrf.mxu0 }
 0x427   : > { %v902_v17 = vadd.f32 %v898_v16, %v830_v14 }
 0x428   : > { %v1313_v18 = vpop.f32.mrf.mxu0 }
 0x429   : > { %903 = vst [vmem:[#allocation5] sm:$0xff] %v902_v17 }
 0x42a PF: > { %905 = sbr.rel (!%p586_p6) target bundleno = 1199 (0x4af), region = 76  ;;  %v913_v1 = vld [vmem:[%s1880_s6] sm:$0xff] (%p586_p6)  ;;  %v1535_v19 = vmov (%p586_p6), 0  }
 0x42b   : > { %1387 = vset.pattern.permute.xlu0 (%p586_p6), %v1535_v19  ;;  %v923_v20 = vld [vmem:[%s1881_s7] sm:$0xff] (%p586_p6) }
 0x42c   : > { %918 = vperm.xlu0 (%p586_p6), %1387, %v913_v1  }
 0x42d   : > { %v906_v21 = vld [vmem:[#allocation4] sm:$0xff] (%p586_p6) }
 0x42e   : > { %v907_v22 = vmul.f32 (%p586_p6), 0.03125, %v906_v21 }
 0x430   : > { %927 = vperm.xlu0 %1387, %v923_v20   ;;  %v908_v23 = vld [vmem:[#allocation5] sm:$0xff]  ;;  %v910_v25 = vmul.f32 %v907_v22, %v907_v22 }
 0x431   : > { %v909_v24 = vmul.f32 0.03125, %v908_v23 }
 0x433   : > { %v911_v26 = vsub.f32 %v909_v24, %v910_v25 }
 0x435   : > { %v912_v27 = vmax.f32 %v911_v26, 0.0 }
 0x437   : > { %v914_v28 = vadd.f32 1e-05, %v912_v27 }
 0x439   : > { %1388 = vrsqrt.f32 %v914_v28 }
 0x446   : > { %v1389_v29 = vpop.eup %1388 }
 0x4a7   : > { %v919_v30 = vpop.permute.xlu0 %918 }
 0x4a8   : > { %v921_v31 = vmul.f32 %v1389_v29, %v919_v30 }
 0x4aa   : > { %922 = vst [vmem:[#allocation10] sm:$0xff] %v921_v31  ;;  %v924_v32 = vmul.f32 %v921_v31, %v907_v22 }
 0x4ab   : > { %v928_v33 = vpop.permute.xlu0 %927 }
 0x4ac   : > { %v930_v34 = vsub.f32 %v928_v33, %v924_v32 }
 0x4ae   : > { %931 = vst [vmem:[#allocation11] sm:$0xff] %v930_v34 }
 0x4af PF: > { %p1821_p8 = scmp.eq.s32.totalorder %s1070_s20, 1  ;;  %s1536_s28 = smov [#allocation8]  }
 0x4b0   : > { %s950_s29 = sshll.u32 %s1536_s28, 4  ;;  %s951_s29 = int_to_ptr.vmem [resolvable:$true] %s950_s29 }
 0x4b1   : > { %s1390_s30 = scalar_lea.vmem %s951_s29, 128  ;;  %p1397_p12 = scmp.lt.s32.totalorder %s951_s29, %s951_s29 }
 0x4b2   : > { %p1391_p9 = scmp.ne.s32.totalorder %s951_s29, %s1390_s30  ;;  %p1398_p13 = scmp.lt.s32.totalorder %s1390_s30, %s1390_s30 }
 0x4b4   : > { %p1392_p10 = pnand %p1391_p9, %p1821_p8  ;;  %p1399_p0 = por %p1398_p13, %p1397_p12 }
 0x4b6   : > { %p1393_p11 = pneg %p1392_p10 }
 0x4b8   : > { %p1400_p1 = pnand %p1399_p0, %p1393_p11 }
 0x4ba   : > { %1403 = shalt.err (!%p1400_p1)
}
 0x4bb   : > { %1317 = dma.vmem_to_hbm [thread:$0]  (%p1821_p8), %s951_s29, 128, %s1883_s9, [#allocation9]  }
 0x4bc   : > { %s1537_s13 = smov [#allocation6]   ;;  %s1538_s15 = smov [#allocation10]  }
 0x4bd   : > { %s939_s14 = sshll.u32 %s1537_s13, 4  ;;  %s961_s16 = sshll.u32 %s1538_s15, 4  ;;  %s940_s14 = int_to_ptr.vmem [resolvable:$true] %s939_s14  ;;  %s962_s16 = int_to_ptr.vmem [resolvable:$true] %s961_s16 }
 0x4be   : > { %s1414_s22 = scalar_lea.vmem %s940_s14, 128  ;;  %p1421_p5 = scmp.lt.s32.totalorder %s940_s14, %s940_s14 }
 0x4bf   : > { %p1415_p2 = scmp.ne.s32.totalorder %s940_s14, %s1414_s22  ;;  %p1422_p6 = scmp.lt.s32.totalorder %s1414_s22, %s1414_s22 }
 0x4c1   : > { %p1416_p3 = pnand %p1415_p2, %p1821_p8  ;;  %p1423_p7 = por %p1422_p6, %p1421_p5 }
 0x4c3   : > { %p1417_p4 = pneg %p1416_p3 }
 0x4c5   : > { %p1424_p9 = pnand %p1423_p7, %p1417_p4 }
 0x4c7   : > { %1427 = shalt.err (!%p1424_p9)
}
 0x4c8   : > { %1315 = dma.vmem_to_hbm [thread:$0]  (%p1821_p8), %s940_s14, 128, %s1882_s8, [#allocation7]  }
 0x4c9   : > { %s1438_s25 = scalar_lea.vmem %s962_s16, 128  ;;  %p1445_p13 = scmp.lt.s32.totalorder %s962_s16, %s962_s16 }
 0x4ca   : > { %p1439_p10 = scmp.ne.s32.totalorder %s962_s16, %s1438_s25  ;;  %p1446_p0 = scmp.lt.s32.totalorder %s1438_s25, %s1438_s25 }
 0x4cc   : > { %p1440_p11 = pnand %p1439_p10, %p1821_p8  ;;  %p1447_p1 = por %p1446_p0, %p1445_p13 }
 0x4ce   : > { %p1441_p12 = pneg %p1440_p11 }
 0x4d0   : > { %p1448_p2 = pnand %p1447_p1, %p1441_p12 }
 0x4d2   : > { %1451 = shalt.err (!%p1448_p2)
}
 0x4d3   : > { %1319 = dma.vmem_to_hbm [thread:$0]  (%p1821_p8), %s962_s16, 128, %s1884_s10, [#allocation9]  }
 0x4d4   : > { %s1539_s28 = smov [#allocation11]  }
 0x4d5   : > { %s972_s29 = sshll.u32 %s1539_s28, 4  ;;  %s973_s29 = int_to_ptr.vmem [resolvable:$true] %s972_s29 }
 0x4d6   : > { %s1462_s30 = scalar_lea.vmem %s973_s29, 128  ;;  %p1469_p6 = scmp.lt.s32.totalorder %s973_s29, %s973_s29 }
 0x4d7   : > { %p1463_p3 = scmp.ne.s32.totalorder %s973_s29, %s1462_s30  ;;  %p1470_p7 = scmp.lt.s32.totalorder %s1462_s30, %s1462_s30 }
 0x4d9   : > { %p1464_p4 = pnand %p1463_p3, %p1821_p8  ;;  %p1471_p9 = por %p1470_p7, %p1469_p6 }
 0x4db   : > { %p1465_p5 = pneg %p1464_p4 }
 0x4dd   : > { %p1472_p10 = pnand %p1471_p9, %p1465_p5 }
 0x4df   : > { %1475 = shalt.err (!%p1472_p10)
}
 0x4e0   : > { %1321 = dma.vmem_to_hbm [thread:$0]  (%p1821_p8), %s973_s29, 128, %s1885_s11, [#allocation12]  }
 0x4e1   : > { %1499 = dma.done.wait (%p1821_p8), [#allocation7], 128  }
 0x4e2   : > { %1501 = vsyncadd (%p1821_p8), [#allocation7], 4294967168 }
 0x4e3   : > { %1503 = dma.done.wait (%p1821_p8), [#allocation9], 256  }
 0x4e4   : > { %1505 = vsyncadd (%p1821_p8), [#allocation9], 4294967040 }
 0x4e5   : > { %1507 = dma.done.wait (%p1821_p8), [#allocation12], 128  }
 0x4e6   : > { %1509 = vsyncadd (%p1821_p8), [#allocation12], 4294967168 }
 0x4e7 PF: > { %s25_s19 = sadd.s32 1, %s1520_s19   ;;  %s1887_s17 = smov %s1516_s18 }
 0x4e8   : > { %p22_p11 = scmp.ge.s32.totalorder %s25_s19, 4   ;;  %s1888_s18 = smov %s1890_s21 }
 0x4ea   :  { %24 = sbr.rel (!%p22_p11) target bundleno = 4 (0x4), region = 130 }
 0x4ef   :  { %997 = vsyncpa [#allocation7], 1 }
 0x4f0   :  { %999 = vsyncpa [#allocation7 + $0x1], 1 }
 0x4f1   :  { %1000 = vsyncpa [#allocation9], 1 }
 0x4f2   :  { %1001 = vsyncpa [#allocation12], 1 }

</bundles_post_ra>
